<compile_context>
chip_gen: v7x
topology: tpu7x:2x2x1
jax: 0.10.0
libtpu: 0.0.40
codegen_flags: <defaults>
</compile_context>

<pallas_src>
import jax
import jax.numpy as jnp
from jax import lax
from jax.experimental import pallas as pl
from jax.experimental.pallas import tpu as pltpu


def _round_up(x: int, m: int) -> int:
    return ((x + m - 1) // m) * m


# ---------------------------------------------------------------------------
# Kernels.  Weight stays in nn.Linear [Out, In] layout; lax.dot_general
# contracts dim 1 of both operands (x[tm, K] . w[tn, K]^T -> [tm, tn]).
# ---------------------------------------------------------------------------
def _linear_relu_kernel(x_ref, w_ref, b_ref, o_ref):
    """Single-K-panel path: one (tm, tn) output tile per grid step."""
    acc = lax.dot_general(
        x_ref[...], w_ref[...],
        dimension_numbers=(((1,), (1,)), ((), ())),   # contract In of both
        preferred_element_type=jnp.float32,
    )
    o_ref[...] = jnp.maximum(acc + b_ref[...], 0.0).astype(o_ref.dtype)


def _linear_relu_kernel_ktiled(x_ref, w_ref, b_ref, o_ref, acc_ref):
    """K-tiled path: accumulate partial products in an f32 VMEM scratch."""
    k = pl.program_id(2)
    partial = lax.dot_general(
        x_ref[...], w_ref[...],
        dimension_numbers=(((1,), (1,)), ((), ())),
        preferred_element_type=jnp.float32,
    )

    @pl.when(k == 0)
    def _():
        acc_ref[...] = partial            # write first panel, no zero-then-add

    @pl.when(k > 0)
    def _():
        acc_ref[...] += partial

    @pl.when(k == pl.num_programs(2) - 1)
    def _():
        o_ref[...] = jnp.maximum(acc_ref[...] + b_ref[...], 0.0).astype(o_ref.dtype)


# ---------------------------------------------------------------------------
# Tile selection.
# ---------------------------------------------------------------------------
_VMEM_TARGET = 24 * 1024 * 1024     # live-footprint target; safe on v5e/v6e/v7x
_VMEM_LIMIT = 48 * 1024 * 1024      # scoped-VMEM limit handed to Mosaic


def _choose_tiles(bp8, outp128, in_dim, itemsize):
    # M tile: whole (sublane-rounded) batch when small; grow tm before tn for
    # large batches so the weight is re-read from HBM fewer times.
    tm = bp8 if bp8 <= 256 else 256
    # N tile: large weight panels (this GEMM is HBM-bound on the weight).
    tn = min(512, outp128)
    # v7x megacore: if the M grid is a single block, keep >= 2 output blocks.
    if bp8 <= 256 and outp128 >= 256 and tn >= outp128:
        tn = max(128, (outp128 // 2) // 128 * 128)

    def footprint(kblk, with_acc):
        f = 2 * (tm * kblk + tn * kblk + tn) * itemsize   # double-buffered inputs
        f += 2 * tm * tn * itemsize                       # double-buffered output
        if with_acc:
            f += tm * tn * 4                              # f32 accumulator
        return f

    in128 = _round_up(in_dim, 128)
    if footprint(in128, False) <= _VMEM_TARGET:
        return tm, tn, in128, False       # single K panel, no accumulator
    tk = 2048
    while tk > 128 and footprint(tk, True) > _VMEM_TARGET:
        tk //= 2
    return tm, tn, tk, True


# ---------------------------------------------------------------------------
# Wrapper.
# ---------------------------------------------------------------------------
@jax.jit
def text_encoder(x, weight, bias):
    """TextEncoder forward: relu(x @ weight.T + bias).

    x:      [B, In]
    weight: [Out, In]   (PyTorch nn.Linear layout, NOT transposed here)
    bias:   [Out]
    returns [B, Out]
    """
    B, In = x.shape
    Out = weight.shape[0]
    itemsize = jnp.dtype(x.dtype).itemsize

    tm, tn, tk, tile_k = _choose_tiles(
        _round_up(B, 8), _round_up(Out, 128), In, itemsize)

    Bp = _round_up(B, tm)
    Inp = _round_up(In, tk)
    Outp = _round_up(Out, tn)

    # Zero-pad only when a dim is not already tile-aligned; exact for
    # matmul + bias + relu, sliced off below.
    xp = x if (Bp == B and Inp == In) else jnp.pad(x, ((0, Bp - B), (0, Inp - In)))
    wp = weight if (Outp == Out and Inp == In) else jnp.pad(
        weight, ((0, Outp - Out), (0, Inp - In)))
    bp = (bias if Outp == Out else jnp.pad(bias, (0, Outp - Out))).reshape(1, Outp)

    m_blocks, n_blocks, k_blocks = Bp // tm, Outp // tn, Inp // tk

    cost = pl.CostEstimate(
        flops=2 * Bp * Inp * Outp + 2 * Bp * Outp,
        transcendentals=0,
        bytes_accessed=(xp.size * n_blocks          # x re-read per N block
                        + wp.size * m_blocks        # weight re-read per M block
                        + bp.size * m_blocks
                        + Bp * Outp) * itemsize,
    )
    cparams = pltpu.CompilerParams(
        dimension_semantics=(("parallel", "parallel") if not tile_k
                             else ("parallel", "parallel", "arbitrary")),
        vmem_limit_bytes=_VMEM_LIMIT,
    )

    if not tile_k:
        grid_spec = pltpu.PrefetchScalarGridSpec(
            num_scalar_prefetch=0,
            grid=(m_blocks, n_blocks),
            in_specs=[
                pl.BlockSpec((tm, Inp), lambda i, j: (i, 0)),   # x panel
                pl.BlockSpec((tn, Inp), lambda i, j: (j, 0)),   # weight [Out, In] panel
                pl.BlockSpec((1, tn), lambda i, j: (0, j)),     # bias
            ],
            out_specs=pl.BlockSpec((tm, tn), lambda i, j: (i, j)),
        )
        kernel = _linear_relu_kernel
    else:
        grid_spec = pltpu.PrefetchScalarGridSpec(
            num_scalar_prefetch=0,
            grid=(m_blocks, n_blocks, k_blocks),
            in_specs=[
                pl.BlockSpec((tm, tk), lambda i, j, k: (i, k)),
                pl.BlockSpec((tn, tk), lambda i, j, k: (j, k)),
                pl.BlockSpec((1, tn), lambda i, j, k: (0, j)),
            ],
            out_specs=pl.BlockSpec((tm, tn), lambda i, j, k: (i, j)),
            scratch_shapes=[pltpu.VMEM((tm, tn), jnp.float32)],
        )
        kernel = _linear_relu_kernel_ktiled

    out_p = pl.pallas_call(
        kernel,
        out_shape=jax.ShapeDtypeStruct((Bp, Outp), x.dtype),
        grid_spec=grid_spec,
        compiler_params=cparams,
        cost_estimate=cost,
    )(xp, wp, bp)

    return out_p[:B, :Out]


def reference(x, weight, bias):
    return jnp.maximum(x @ weight.T + bias[None, :], 0.0)


if __name__ == "__main__":
    key = jax.random.PRNGKey(0)
    k_x, k_w, k_b = jax.random.split(key, 3)

    B = 8             # batch of text feature vectors
    inputsize = 32
    outputsize = 64

    x = jax.random.normal(k_x, (B, inputsize), dtype=jnp.float32)
    # Deterministic init mimicking nn.Linear default (uniform in +/- 1/sqrt(in)).
    bound = 1.0 / (inputsize ** 0.5)
    weight = jax.random.uniform(
        k_w, (outputsize, inputsize), minval=-bound, maxval=bound, dtype=jnp.float32
    )
    bias = jax.random.uniform(
        k_b, (outputsize,), minval=-bound, maxval=bound, dtype=jnp.float32
    )

    out = jax.block_until_ready(text_encoder(x, weight, bias))
    ref = reference(x, weight, bias)

    assert out.shape == (B, outputsize)
    assert jnp.allclose(out, ref, atol=1e-5, rtol=1e-5)

    print("KERNEL_OK")
</pallas_src>

<mosaic_0001>
module attributes {stable_mosaic.version = 11 : i64} {
  func.func @_linear_relu_kernel(%arg0: i32, %arg1: i32, %arg2: memref<8x128xf32, #tpu.memory_space<vmem>>, %arg3: memref<128x128xf32, #tpu.memory_space<vmem>>, %arg4: memref<1x128xf32, #tpu.memory_space<vmem>>, %arg5: memref<8x128xf32, #tpu.memory_space<vmem>>) attributes {dimension_semantics = [#tpu.dimension_semantics<parallel>, #tpu.dimension_semantics<parallel>], iteration_bounds = array<i64: 1, 1>, scalar_prefetch = 0 : i64, scratch_operands = 0 : i64, tpu.core_type = #tpu.core_type<tc>, window_params = [{transform_indices = @transform_0, window_bounds = array<i64: 8, 128>}, {transform_indices = @transform_1, window_bounds = array<i64: 128, 128>}, {transform_indices = @transform_2, window_bounds = array<i64: 1, 128>}, {transform_indices = @transform_3, window_bounds = array<i64: 8, 128>}]} {
    %c0 = arith.constant 0 : index
    %c0_0 = arith.constant 0 : index
    %0 = vector.load %arg2[%c0, %c0_0] : memref<8x128xf32, #tpu.memory_space<vmem>>, vector<8x128xf32>
    %c0_1 = arith.constant 0 : index
    %c0_2 = arith.constant 0 : index
    %1 = vector.load %arg3[%c0_1, %c0_2] : memref<128x128xf32, #tpu.memory_space<vmem>>, vector<128x128xf32>
    %cst = arith.constant dense<0.000000e+00> : vector<8x128xf32>
    %2 = tpu.matmul %0, %1, %cst {dimension_numbers = #tpu.dot_dimension_numbers<[1], [1], [0], [0], [0, 0, 1, 0], [], []>} : vector<8x128xf32>, vector<128x128xf32>, vector<8x128xf32> -> vector<8x128xf32>
    %c0_3 = arith.constant 0 : index
    %c0_4 = arith.constant 0 : index
    %3 = vector.load %arg4[%c0_3, %c0_4] : memref<1x128xf32, #tpu.memory_space<vmem>>, vector<1x128xf32>
    %4 = vector.broadcast %3 : vector<1x128xf32> to vector<8x128xf32>
    %5 = arith.addf %2, %4 : vector<8x128xf32>
    %cst_5 = arith.constant 0.000000e+00 : f32
    %6 = vector.broadcast %cst_5 : f32 to vector<8x128xf32>
    %7 = arith.maximumf %5, %6 : vector<8x128xf32>
    %c0_6 = arith.constant 0 : index
    %c0_7 = arith.constant 0 : index
    %8 = vector.load %arg5[%c0_6, %c0_7] : memref<8x128xf32, #tpu.memory_space<vmem>>, vector<8x128xf32>
    tpu.vector_store %arg5[%c0_6, %c0_7], %7 {strides = array<i32>} : memref<8x128xf32, #tpu.memory_space<vmem>>, vector<8x128xf32>,
    return
  }
  func.func @transform_0(%arg0: i32, %arg1: i32) -> (i32, i32) {
    %c0_i32 = arith.constant 0 : i32
    %c0_i32_0 = arith.constant 0 : i32
    return %arg0, %c0_i32 : i32, i32
  }
  func.func @transform_1(%arg0: i32, %arg1: i32) -> (i32, i32) {
    %c0_i32 = arith.constant 0 : i32
    %c0_i32_0 = arith.constant 0 : i32
    return %arg1, %c0_i32 : i32, i32
  }
  func.func @transform_2(%arg0: i32, %arg1: i32) -> (i32, i32) {
    %c0_i32 = arith.constant 0 : i32
    %c0_i32_0 = arith.constant 0 : i32
    return %c0_i32, %arg1 : i32, i32
  }
  func.func @transform_3(%arg0: i32, %arg1: i32) -> (i32, i32) {
    %c0_i32 = arith.constant 0 : i32
    return %arg0, %arg1 : i32, i32
  }
}

</mosaic_0001>

<bundles_post_ra>
// kernel: text_encoder.1
= control target key start
LH: loop header
LB: loop body
LE: loop exit
PB: predicated region body
PF: predicated region fallthrough
CT: control target
= control target key end

     0   :  { %v230_v2 = vmov 0.0|0.0   ;;  %vm231_vm0 = vmmov 0   ;;  %v232_v4 = vmov 0.0   ;;  %s320_s0 = inlined_call_operand.vmem [shape: f32[8,128], index: 0, kind: input, shape index: {}]   ;;  %s321_s1 = inlined_call_operand.vmem [shape: f32[128,128], index: 1, kind: input, shape index: {}]   ;;  %s322_s2 = inlined_call_operand.vmem [shape: f32[1,128], index: 2, kind: input, shape index: {}]   ;;  %s323_s3 = inlined_call_operand.hbm [shape: f32[8,128], index: 3, kind: output, shape index: {}]  }
   0x1   :  { %v16_v0 = vld [vmem:[%s321_s1] sm:$0xff]  ;;  %v17_v1 = vld [vmem:[%s321_s1 + $0x8] sm:$0xff]  ;;  %178 = vmatprep.subr.bf16.mxu0 %v230_v2  ;;  %175 = vmatprep.mubr.msk.f32.mxu0 %vm231_vm0, %v232_v4  ;;  %v18_v5 = vld [vmem:[%s321_s1 + $0x10] sm:$0xff] }
   0x2   :  { %v179_v3 = vpack.c.bf16 %v17_v1, %v16_v0  ;;  %v19_v6 = vld [vmem:[%s321_s1 + $0x18] sm:$0xff] }
   0x4   :  { %180 = vmatpush3.bf16.xpose.msra.mxu0 %v179_v3 }
   0x5   :  { %181 = vmatprep.subr.bf16.mxu0 %v230_v2 }
   0x6   :  { %8 = vsyncpa [#allocation3], 0  ;;  %v182_v7 = vpack.c.bf16 %v19_v6, %v18_v5  ;;  %v20_v8 = vld [vmem:[%s321_s1 + $0x20] sm:$0xff]  ;;  %v21_v9 = vld [vmem:[%s321_s1 + $0x28] sm:$0xff]  ;;  %s233_s21 = smov [#allocation2]  }
   0x7   :  { %v185_v10 = vpack.c.bf16 %v21_v9, %v20_v8  ;;  %v22_v11 = vld [vmem:[%s321_s1 + $0x30] sm:$0xff]  ;;  %v23_v12 = vld [vmem:[%s321_s1 + $0x38] sm:$0xff]  ;;  %v24_v14 = vld [vmem:[%s321_s1 + $0x40] sm:$0xff]  ;;  %s117_s22 = sshll.u32 %s233_s21, 4  ;;  %s118_s22 = int_to_ptr.vmem [resolvable:$true] %s117_s22 }
   0x8   :  { %v188_v13 = vpack.c.bf16 %v23_v12, %v22_v11  ;;  %v25_v15 = vld [vmem:[%s321_s1 + $0x48] sm:$0xff]  ;;  %v26_v17 = vld [vmem:[%s321_s1 + $0x50] sm:$0xff]  ;;  %v27_v18 = vld [vmem:[%s321_s1 + $0x58] sm:$0xff]  ;;  %p211_p1 = scmp.lt.s32.totalorder %s118_s22, %s118_s22 }
   0x9   :  { %v191_v16 = vpack.c.bf16 %v25_v15, %v24_v14  ;;  %v194_v19 = vpack.c.bf16 %v27_v18, %v26_v17  ;;  %v28_v20 = vld [vmem:[%s321_s1 + $0x60] sm:$0xff]  ;;  %v29_v21 = vld [vmem:[%s321_s1 + $0x68] sm:$0xff]  ;;  %v30_v23 = vld [vmem:[%s321_s1 + $0x70] sm:$0xff] }
   0xa   :  { %v197_v22 = vpack.c.bf16 %v29_v21, %v28_v20  ;;  %v31_v24 = vld [vmem:[%s321_s1 + $0x78] sm:$0xff]  ;;  %v15_v26 = vld [vmem:[%s320_s0] sm:$0xff]  ;;  %s206_s1 = scalar_lea.vmem %s118_s22, 128 }
   0xb   :  { %v200_v25 = vpack.c.bf16 %v31_v24, %v30_v23  ;;  %v125_v27 = vld [vmem:[%s322_s2] ss:$0 sm:$0xff]  ;;  %p207_p0 = scmp.ne.s32.totalorder %s118_s22, %s206_s1  ;;  %p212_p2 = scmp.lt.s32.totalorder %s206_s1, %s206_s1 }
   0xc   :  { %183 = vmatpush3.bf16.xpose.msra.mxu0 %v182_v7 }
   0xd   :  { %184 = vmatprep.subr.bf16.mxu0 %v230_v2  ;;  %p213_p3 = por %p212_p2, %p211_p1 }
   0xf   :  { %p214_p4 = pnand %p213_p3, %p207_p0 }
  0x14   :  { %186 = vmatpush3.bf16.xpose.msra.mxu0 %v185_v10 }
  0x15   :  { %187 = vmatprep.subr.bf16.mxu0 %v230_v2 }
  0x1c   :  { %189 = vmatpush3.bf16.xpose.msra.mxu0 %v188_v13 }
  0x1d   :  { %190 = vmatprep.subr.bf16.mxu0 %v230_v2 }
  0x24   :  { %192 = vmatpush3.bf16.xpose.msra.mxu0 %v191_v16 }
  0x25   :  { %193 = vmatprep.subr.bf16.mxu0 %v230_v2 }
  0x2c   :  { %195 = vmatpush3.bf16.xpose.msra.mxu0 %v194_v19 }
  0x2d   :  { %196 = vmatprep.subr.bf16.mxu0 %v230_v2 }
  0x34   :  { %198 = vmatpush3.bf16.xpose.msra.mxu0 %v197_v22 }
  0x35   :  { %199 = vmatprep.subr.bf16.mxu0 %v230_v2 }
  0x3c   :  { %201 = vmatpush3.bf16.xpose.msra.mxu0 %v200_v25 }
  0x43   :  { %176 = vmatmul.mubr.f32.vlgmr.msra.gmra.mrb[0].mxu0 %v15_v26 }
 0x116   :  { %v105_v28 = vpop.f32.mrb[0].mxu0 }
 0x117   :  { %v106_v29 = vadd.f32 %v125_v27, %v105_v28  ;;  %v177_v30 = vpop.f32.mrb[1].mxu0 }
 0x119   :  { %v109_v31 = vmax.f32 %v106_v29, 0.0 }
 0x11b   :  { %110 = vst [vmem:[#allocation2] sm:$0xff] %v109_v31 }
 0x11c   :  { %217 = shalt.err (!%p214_p4)
}
 0x11d   :  { %s218_s24 = scalar_lea.hbm %s323_s3, 128 }
 0x11e   :  { %p219_p5 = scmp.ne.s32.totalorder %s323_s3, %s218_s24  ;;  %p222_p6 = scmp.lt.u32.totalorder %s218_s24, %s323_s3 }
 0x120   :  { %p224_p7 = pnand %p222_p6, %p219_p5 }
 0x122   :  { %227 = shalt.err (!%p224_p7)
}
 0x123   :  { %120 = dma.vmem_to_hbm [thread:$0]  %s118_s22, 128, %s323_s3, [#allocation3]  }
 0x124   :  { %228 = dma.done.wait [#allocation3], 128  }
 0x125   :  { %229 = vsyncadd [#allocation3], 4294967168 }
 0x126   :  { %124 = vsyncpa [#allocation3], 1 }

</bundles_post_ra>
